<compile_context>
chip_gen: v5e
topology: v5e:2x2
jax: 0.10.0
libtpu: 0.0.40
codegen_flags: <defaults>
</compile_context>

<pallas_src>
import functools
import math

import jax
import jax.numpy as jnp
from jax.experimental import pallas as pl
from jax.experimental.pallas import tpu as pltpu


def _round_up(x: int, m: int) -> int:
    return ((x + m - 1) // m) * m


def _bilinear_kernel(x1_ref, x2_ref, w_ref, o_ref):
    # x1_ref: (tm, in1)   x2_ref: (tm, in2)
    # w_ref : (in1, 2*in2)  (= [weight[0] | weight[1]] fused along columns)
    # o_ref : (tm, 2)
    in2 = x2_ref.shape[-1]

    x1 = x1_ref[...]
    x2 = x2_ref[...].astype(jnp.float32)

    # One MXU push for both bilinear forms (f32 accumulation).
    b = jnp.dot(x1, w_ref[...], preferred_element_type=jnp.float32)  # (tm, 2*in2)

    # VPU multiply + XLU lane reduction, per output column.  Reduction is
    # strictly per-row, so padded rows in a partial last block cannot
    # contaminate real rows.
    s1 = jnp.sum(b[:, :in2] * x2, axis=1, keepdims=True)  # (tm, 1)
    s2 = jnp.sum(b[:, in2:] * x2, axis=1, keepdims=True)  # (tm, 1)

    o_ref[...] = jnp.concatenate([s1, s2], axis=-1).astype(o_ref.dtype)


@functools.partial(jax.jit, static_argnames=("tm",))
def my_bilinear(input1, input2, weight, *, tm=512):
    """Pallas implementation of MyBilinear.forward.

    input1: (N, in1), input2: (N, in2), weight: (out_features, in1, in2).
    Only weight[0] and weight[1] are used (matching the PyTorch forward).
    Returns (N, 2) in input1.dtype.
    """
    N, in1 = input1.shape
    _, in2 = input2.shape

    # Fuse the two weight slices used by the forward into one matrix.
    w_cat = jnp.concatenate([weight[0], weight[1]], axis=1)  # (in1, 2*in2)

    # Tile selection: as large as requested, but shrink so the grid has at
    # least 2 steps when N permits (v7x megacore), and keep the sublane tile
    # a multiple of 8 (f32).  Partial last blocks are handled by Pallas.
    tm_eff = max(8, min(tm, _round_up(pl.cdiv(N, 2), 8)))
    grid = (pl.cdiv(N, tm_eff),)

    itemsize = jnp.dtype(input1.dtype).itemsize
    w_itemsize = jnp.dtype(weight.dtype).itemsize
    cost = pl.CostEstimate(
        flops=2 * N * in1 * (2 * in2) + 4 * N * in2,
        transcendentals=0,
        bytes_accessed=(N * in1 * itemsize
                        + N * in2 * itemsize
                        + in1 * 2 * in2 * w_itemsize
                        + N * 2 * itemsize),
    )

    return pl.pallas_call(
        _bilinear_kernel,
        out_shape=jax.ShapeDtypeStruct((N, 2), input1.dtype),
        grid_spec=pltpu.PrefetchScalarGridSpec(
            num_scalar_prefetch=0,
            grid=grid,
            in_specs=[
                pl.BlockSpec((tm_eff, in1), lambda i: (i, 0)),     # input1 rows
                pl.BlockSpec((tm_eff, in2), lambda i: (i, 0)),     # input2 rows
                pl.BlockSpec((in1, 2 * in2), lambda i: (0, 0)),    # fused weight (resident)
            ],
            out_specs=pl.BlockSpec((tm_eff, 2), lambda i: (i, 0)),
        ),
        compiler_params=pltpu.CompilerParams(
            dimension_semantics=("parallel",),
        ),
        cost_estimate=cost,
    )(input1, input2, w_cat)


def _reference(input1, input2, weight):
    b1 = jnp.sum((input1 @ weight[0]) * input2, axis=1, keepdims=True)
    b2 = jnp.sum((input1 @ weight[1]) * input2, axis=1, keepdims=True)
    return jnp.concatenate([b1, b2], axis=-1)


if __name__ == "__main__":
    # Module config (small, consistent with the forward):
    in1_features = 32
    in2_features = 32
    out_features = 2          # forward only uses weight[0] and weight[1]

    key = jax.random.PRNGKey(0)
    k_w, k_x1, k_x2 = jax.random.split(key, 3)

    # Deterministic init mirroring reset_parameters(): U(-1/sqrt(in1), 1/sqrt(in1))
    bound = 1.0 / math.sqrt(in1_features)
    weight = jax.random.uniform(
        k_w, (out_features, in1_features, in2_features),
        dtype=jnp.float32, minval=-bound, maxval=bound)

    # Case 1: tiny batch (single grid step).
    N = 8
    input1 = jax.random.normal(k_x1, (N, in1_features), dtype=jnp.float32)
    input2 = jax.random.normal(k_x2, (N, in2_features), dtype=jnp.float32)

    out = jax.block_until_ready(my_bilinear(input1, input2, weight))
    ref = _reference(input1, input2, weight)
    assert out.shape == (N, 2), out.shape
    assert jnp.allclose(out, ref, atol=1e-5, rtol=1e-5), (out, ref)

    # Case 2: multi-step grid with a partial last block (exercises masking
    # and the >=2-step tile selection).
    N2 = 24
    k_y1, k_y2 = jax.random.split(k_x1, 2)
    y1 = jax.random.normal(k_y1, (N2, in1_features), dtype=jnp.float32)
    y2 = jax.random.normal(k_y2, (N2, in2_features), dtype=jnp.float32)

    out2 = jax.block_until_ready(my_bilinear(y1, y2, weight))
    ref2 = _reference(y1, y2, weight)
    assert out2.shape == (N2, 2), out2.shape
    assert jnp.allclose(out2, ref2, atol=1e-5, rtol=1e-5), (out2, ref2)

    print("KERNEL_OK")
</pallas_src>

<mosaic_0001>
module attributes {stable_mosaic.version = 11 : i64} {
  func.func @_bilinear_kernel(%arg0: i32, %arg1: memref<8x32xf32, #tpu.memory_space<vmem>>, %arg2: memref<8x32xf32, #tpu.memory_space<vmem>>, %arg3: memref<32x64xf32, #tpu.memory_space<vmem>>, %arg4: memref<8x2xf32, #tpu.memory_space<vmem>>) attributes {dimension_semantics = [#tpu.dimension_semantics<parallel>], iteration_bounds = array<i64: 1>, scalar_prefetch = 0 : i64, scratch_operands = 0 : i64, tpu.core_type = #tpu.core_type<tc>, window_params = [{transform_indices = @transform_0, window_bounds = array<i64: 8, 32>}, {transform_indices = @transform_1, window_bounds = array<i64: 8, 32>}, {pipeline_mode = #tpu.pipeline_mode<synchronous>, transform_indices = @transform_2, window_bounds = array<i64: 32, 64>}, {transform_indices = @transform_3, window_bounds = array<i64: 8, 2>}]} {
    %c0 = arith.constant 0 : index
    %c0_0 = arith.constant 0 : index
    %0 = vector.load %arg1[%c0, %c0_0] : memref<8x32xf32, #tpu.memory_space<vmem>>, vector<8x32xf32>
    %c0_1 = arith.constant 0 : index
    %c0_2 = arith.constant 0 : index
    %1 = vector.load %arg2[%c0_1, %c0_2] : memref<8x32xf32, #tpu.memory_space<vmem>>, vector<8x32xf32>
    %c0_3 = arith.constant 0 : index
    %c0_4 = arith.constant 0 : index
    %2 = vector.load %arg3[%c0_3, %c0_4] : memref<32x64xf32, #tpu.memory_space<vmem>>, vector<32x64xf32>
    %cst = arith.constant dense<0.000000e+00> : vector<8x64xf32>
    %3 = tpu.matmul %0, %2, %cst {dimension_numbers = #tpu.dot_dimension_numbers<[1], [0], [0], [1], [0, 0, 1, 1], [], []>} : vector<8x32xf32>, vector<32x64xf32>, vector<8x64xf32> -> vector<8x64xf32>
    %4 = vector.extract_strided_slice %3 {offsets = [0, 0], sizes = [8, 32], strides = [1, 1]} : vector<8x64xf32> to vector<8x32xf32>
    %5 = arith.mulf %4, %1 : vector<8x32xf32>
    %cst_5 = arith.constant dense<0.000000e+00> : vector<8xf32>
    %6 = vector.multi_reduction <add>, %5, %cst_5 [1] : vector<8x32xf32> to vector<8xf32>
    %7 = vector.shape_cast %6 : vector<8xf32> to vector<8x1xf32>
    %8 = vector.extract_strided_slice %3 {offsets = [0, 32], sizes = [8, 32], strides = [1, 1]} : vector<8x64xf32> to vector<8x32xf32>
    %9 = arith.mulf %8, %1 : vector<8x32xf32>
    %cst_6 = arith.constant dense<0.000000e+00> : vector<8xf32>
    %10 = vector.multi_reduction <add>, %9, %cst_6 [1] : vector<8x32xf32> to vector<8xf32>
    %11 = vector.shape_cast %10 : vector<8xf32> to vector<8x1xf32>
    %12 = tpu.concatenate %7, %11 in 1 : vector<8x1xf32>, vector<8x1xf32> -> vector<8x2xf32>
    %c0_7 = arith.constant 0 : index
    %c0_8 = arith.constant 0 : index
    %13 = vector.load %arg4[%c0_7, %c0_8] : memref<8x2xf32, #tpu.memory_space<vmem>>, vector<8x2xf32>
    tpu.vector_store %arg4[%c0_7, %c0_8], %12 {strides = array<i32>} : memref<8x2xf32, #tpu.memory_space<vmem>>, vector<8x2xf32>,
    return
  }
  func.func @transform_0(%arg0: i32) -> (i32, i32) {
    %c0_i32 = arith.constant 0 : i32
    %c0_i32_0 = arith.constant 0 : i32
    return %arg0, %c0_i32 : i32, i32
  }
  func.func @transform_1(%arg0: i32) -> (i32, i32) {
    %c0_i32 = arith.constant 0 : i32
    %c0_i32_0 = arith.constant 0 : i32
    return %arg0, %c0_i32 : i32, i32
  }
  func.func @transform_2(%arg0: i32) -> (i32, i32) {
    %c0_i32 = arith.constant 0 : i32
    %c0_i32_0 = arith.constant 0 : i32
    %c0_i32_1 = arith.constant 0 : i32
    return %c0_i32, %c0_i32_0 : i32, i32
  }
  func.func @transform_3(%arg0: i32) -> (i32, i32) {
    %c0_i32 = arith.constant 0 : i32
    %c0_i32_0 = arith.constant 0 : i32
    return %arg0, %c0_i32 : i32, i32
  }
}

</mosaic_0001>

<bundles_post_ra>
// kernel: my_bilinear.1
= control target key start
LH: loop header
LB: loop body
LE: loop exit
PB: predicated region body
PF: predicated region fallthrough
CT: control target
= control target key end

     0   :  { %s71_s20 = smov 32   ;;  %vm20_vm0 = vcmask 261120   ;;  %vm60_vm1 = vcmask 7168   ;;  %vm62_vm2 = vcmask 15360   ;;  %s114_s2 = inlined_call_operand.vmem [shape: f32[32,64], index: 2, kind: input, shape index: {}]   ;;  %s115_s1 = inlined_call_operand.vmem [shape: f32[8,32], index: 1, kind: input, shape index: {}]   ;;  %s116_s0 = inlined_call_operand.vmem [shape: f32[8,32], index: 0, kind: input, shape index: {}]   ;;  %s117_s3 = inlined_call_operand.vmem [shape: f32[8,2], index: 3, kind: output, shape index: {}]  }
   0x1   :  { %v19_v0 = vld [vmem:[%s114_s2 + $0x18] sm:$0xff]  ;;  %v18_v1 = vld [vmem:[%s114_s2 + $0x10] sm:$0xff]  ;;  %v15_v2 = vld [vmem:[%s115_s1] sm:$0xff]  ;;  %s72_s1 = smov 96  }
   0x2   :  { %36 = vmatpush.msra.mxu0 %v19_v0  ;;  %v17_v3 = vld [vmem:[%s114_s2 + $0x8] sm:$0xff]  ;;  %49 = vrot.lane.b32.xlu0 %v15_v2, %s71_s20  ;;  %v16_v4 = vld [vmem:[%s114_s2] sm:$0xff] }
   0x3   :  { %v14_v5 = vld [vmem:[%s116_s0] sm:$0xff] }
   0x4   :  { %37 = vmatpush.msra.mxu0 %v18_v1 }
   0x6   :  { %38 = vmatpush.msra.mxu0 %v17_v3 }
   0x8   :  { %39 = vmatpush.msra.mxu0 %v16_v4 }
   0x9   :  { %68 = vmatmul.msk.f32.vlgmr.msra.gmra.mxu0 %vm20_vm0, %v14_v5 }
  0x74   :  { %v50_v6 = vpop.permute.xlu0 %49 }
  0x86   :  { %v41_v7 = vpop.f32.mrf.mxu0 }
  0x87   :  { %v44_v8 = vmul.f32 %v41_v7, %v15_v2  ;;  %v52_v9 = vmul.f32 %v50_v6, %v41_v7 }
  0x89   :  { %54 = vrot.lane.b32.xlu0 %v52_v9, %s72_s1  ;;  %v45_v10 = vsel %vm20_vm0, %v44_v8, 0.0 }
  0x8a   :  { %46 = vadd.xlane.f32.xlu1 %v45_v10 }
  0xfb   :  { %v55_v11 = vpop.permute.xlu0 %54 }
  0xfc   :  { %v57_v12 = vsel %vm20_vm0, %v55_v11, 0.0 }
  0xfd   :  { %58 = vadd.xlane.f32.xlu1 %v57_v12  ;;  %v47_v13 = vpop.xlane.xlu1 %46 }
 0x170   :  { %v59_v14 = vpop.xlane.xlu1 %58 }
 0x171   :  { %v61_v15 = vsel %vm60_vm1, %v47_v13, %v59_v14 }
 0x172   :  { %63 = vst.msk [vmem:[%s117_s3] sm:$0xff] %vm62_vm2, %v61_v15 }

</bundles_post_ra>
